<compile_context>
chip_gen: v5e
topology: v5e:2x2
jax: 0.10.0
libtpu: 0.0.40
codegen_flags: <defaults>
</compile_context>

<pallas_src>
import jax
import jax.numpy as jnp
from jax.experimental import pallas as pl
from jax.experimental.pallas import tpu as pltpu

LANE = 128
SUBLANE = 8


def _softmax_c_kernel(x_ref, o_ref):
    """Softmax over the channel (sublane) axis of a (bn, C, TILE_HW) block.

    C sits on sublanes (cheap XLU reduce), HW on the 128-lane axis (lane-dense
    unmasked loads/stores for interior blocks). Math is done in f32.
    """
    x = x_ref[...].astype(jnp.float32)
    m = jnp.max(x, axis=1, keepdims=True)      # cross-sublane reduce (XLU)
    e = jnp.exp(x - m)                         # EUP
    s = jnp.sum(e, axis=1, keepdims=True)      # cross-sublane reduce (XLU)
    # Exact normalization: restores sum-to-1, zero wall-clock cost (HBM-bound).
    o_ref[...] = (e / s).astype(o_ref.dtype)


def _round_up(a: int, b: int) -> int:
    return (a + b - 1) // b * b


def _softmax_channels(x3: jax.Array, bn: int, tile_hw: int, vmem_limit_bytes: int) -> jax.Array:
    """x3: (N, C, HW); softmax over axis=1 with (bn, C, tile_hw) blocks."""
    n, c, hw = x3.shape
    grid = (pl.cdiv(n, bn), pl.cdiv(hw, tile_hw))
    itemsize = jnp.dtype(x3.dtype).itemsize
    cost = pl.CostEstimate(
        flops=4 * n * c * hw,
        transcendentals=n * c * hw + n * hw,
        bytes_accessed=2 * n * c * hw * itemsize,
    )
    return pl.pallas_call(
        _softmax_c_kernel,
        out_shape=jax.ShapeDtypeStruct((n, c, hw), x3.dtype),
        grid_spec=pltpu.PrefetchScalarGridSpec(
            num_scalar_prefetch=0,
            grid=grid,
            # Block (bn, C, tile_hw): second-to-last dim equals the full C extent
            # (satisfies the (8,128) rule even for small C); last dim is either a
            # multiple of 128 or the full HW extent.
            in_specs=[pl.BlockSpec((bn, c, tile_hw), lambda i, j: (i, 0, j))],
            out_specs=pl.BlockSpec((bn, c, tile_hw), lambda i, j: (i, 0, j)),
        ),
        compiler_params=pltpu.CompilerParams(
            dimension_semantics=("parallel", "parallel"),
            vmem_limit_bytes=vmem_limit_bytes,
        ),
        cost_estimate=cost,
    )(x3)


def pallas_softmax(x: jax.Array, dim: int = 1, *,
                   target_block_bytes: int = 2 << 20,
                   fallback_bytes: int = 0) -> jax.Array:
    """Equivalent of torch.nn.functional.softmax(x, dim=1) for NCHW x.

    target_block_bytes ~2 MiB works on every generation (v5e/v6e/v7x); v6e has
    headroom to raise it. fallback_bytes (default 0 = always Pallas) lets callers
    route tiny activations to XLA's fused softmax where launch overhead dominates.
    """
    assert x.ndim == 4 and dim == 1, "this instantiation handles NCHW, dim=1"
    n, c, h, w = x.shape
    hw = h * w
    itemsize = jnp.dtype(x.dtype).itemsize

    if n * c * hw * itemsize < fallback_bytes:
        return jax.nn.softmax(x, axis=1)

    # Sublane-padded channel count = real VMEM footprint of the C axis
    # (f32 pads C to a multiple of 8, bf16 to 16, int8/fp8 to 32).
    padded_c = _round_up(c, SUBLANE * max(1, 4 // itemsize))
    row_bytes = padded_c * _round_up(hw, LANE) * itemsize   # one (C, HW) slab

    if row_bytes <= target_block_bytes:
        # Full spatial row per block: one contiguous (C, HW) DMA per image, no
        # padding logic. Batch N into the block to amortize grid-step overhead.
        tile_hw = hw
        bn = max(1, min(n, target_block_bytes // row_bytes))
        # v7x has 2 TensorCores: keep >=2 roughly even grid blocks when the batch
        # allows it. Negligible cost on 1-TC chips.
        if bn >= n and n > 1:
            bn = (n + 1) // 2
        block_bytes = bn * row_bytes
    else:
        # Large feature maps: split HW into lane-dense tiles. Pallas handles the
        # ragged last block (masked stores; per-lane channel softmax keeps the
        # undefined padded lanes from affecting valid output).
        bn = 1
        tile_hw = max(LANE, (target_block_bytes // (padded_c * itemsize)) // LANE * LANE)
        tile_hw = min(tile_hw, _round_up(hw, LANE))
        block_bytes = padded_c * tile_hw * itemsize

    # 2 arrays (in+out) x 2 pipeline buffers x block, plus headroom; cap under
    # v7x's 64 MiB physical VMEM (v5e/v6e have 128 MiB, default scoped limit is
    # lower so we always set it explicitly).
    vmem_limit = int(min(48 << 20, max(16 << 20, 4 * block_bytes + (4 << 20))))

    x3 = x.reshape(n, c, hw)        # contiguous view of NCHW; no transpose, no pad
    y3 = _softmax_channels(x3, bn, tile_hw, vmem_limit)
    return y3.reshape(n, c, h, w)


class GPFuncLayer:
    """JAX/Pallas port of the PyTorch GPFuncLayer: forward(x) = func(x, *argc, **kwargs)."""

    def __init__(self, func, *argc, **kwargs):
        self.func = func
        self.argc = argc
        self.kwargs = kwargs

    def __call__(self, x):
        return self.func(x, *self.argc, **self.kwargs)


if __name__ == "__main__":
    key = jax.random.PRNGKey(0)
    # Small NCHW input consistent with the module's typical use.
    x = jax.random.normal(key, (2, 4, 16, 16), dtype=jnp.float32)

    layer = GPFuncLayer(pallas_softmax, dim=1)  # mirrors GPFuncLayer(F.softmax, dim=1)
    y = jax.block_until_ready(layer(x))

    ref = jax.nn.softmax(x, axis=1)
    assert y.shape == x.shape and y.dtype == x.dtype
    assert jnp.allclose(jnp.sum(y, axis=1), 1.0, atol=1e-4)
    assert jnp.allclose(y, ref, atol=1e-5, rtol=1e-5)

    # Exercise the non-128-multiple HW + lane-split (ragged last block) path.
    x2 = jax.random.normal(jax.random.PRNGKey(1), (1, 4, 15, 20), dtype=jnp.float32)
    y2 = jax.block_until_ready(pallas_softmax(x2, dim=1, target_block_bytes=4096))
    assert jnp.allclose(y2, jax.nn.softmax(x2, axis=1), atol=1e-5, rtol=1e-5)

    print("KERNEL_OK")
</pallas_src>

<mosaic_0001>
module attributes {stable_mosaic.version = 11 : i64} {
  func.func @_softmax_c_kernel(%arg0: i32, %arg1: i32, %arg2: memref<1x4x256xf32, #tpu.memory_space<vmem>>, %arg3: memref<1x4x256xf32, #tpu.memory_space<vmem>>) attributes {dimension_semantics = [#tpu.dimension_semantics<parallel>, #tpu.dimension_semantics<parallel>], iteration_bounds = array<i64: 2, 1>, scalar_prefetch = 0 : i64, scratch_operands = 0 : i64, tpu.core_type = #tpu.core_type<tc>, window_params = [{transform_indices = @transform_0, window_bounds = array<i64: 1, 4, 256>}, {transform_indices = @transform_1, window_bounds = array<i64: 1, 4, 256>}]} {
    %c0 = arith.constant 0 : index
    %c0_0 = arith.constant 0 : index
    %c0_1 = arith.constant 0 : index
    %0 = vector.load %arg2[%c0, %c0_0, %c0_1] : memref<1x4x256xf32, #tpu.memory_space<vmem>>, vector<1x4x256xf32>
    %cst = arith.constant dense<0xFF800000> : vector<1x256xf32>
    %1 = vector.multi_reduction <maximumf>, %0, %cst [1] : vector<1x4x256xf32> to vector<1x256xf32>
    %2 = vector.shape_cast %1 : vector<1x256xf32> to vector<1x1x256xf32>
    %3 = vector.broadcast %2 : vector<1x1x256xf32> to vector<1x4x256xf32>
    %4 = arith.subf %0, %3 : vector<1x4x256xf32>
    %5 = math.exp %4 : vector<1x4x256xf32>
    %cst_2 = arith.constant dense<0.000000e+00> : vector<1x256xf32>
    %6 = vector.multi_reduction <add>, %5, %cst_2 [1] : vector<1x4x256xf32> to vector<1x256xf32>
    %7 = vector.shape_cast %6 : vector<1x256xf32> to vector<1x1x256xf32>
    %8 = vector.broadcast %7 : vector<1x1x256xf32> to vector<1x4x256xf32>
    %9 = arith.divf %5, %8 : vector<1x4x256xf32>
    %c0_3 = arith.constant 0 : index
    %c0_4 = arith.constant 0 : index
    %c0_5 = arith.constant 0 : index
    %10 = vector.load %arg3[%c0_3, %c0_4, %c0_5] : memref<1x4x256xf32, #tpu.memory_space<vmem>>, vector<1x4x256xf32>
    tpu.vector_store %arg3[%c0_3, %c0_4, %c0_5], %9 {strides = array<i32>} : memref<1x4x256xf32, #tpu.memory_space<vmem>>, vector<1x4x256xf32>,
    return
  }
  func.func @transform_0(%arg0: i32, %arg1: i32) -> (i32, i32, i32) {
    %c0_i32 = arith.constant 0 : i32
    %c0_i32_0 = arith.constant 0 : i32
    return %arg0, %c0_i32, %arg1 : i32, i32, i32
  }
  func.func @transform_1(%arg0: i32, %arg1: i32) -> (i32, i32, i32) {
    %c0_i32 = arith.constant 0 : i32
    %c0_i32_0 = arith.constant 0 : i32
    return %arg0, %c0_i32, %arg1 : i32, i32, i32
  }
}

</mosaic_0001>

<bundles_post_ra>
// kernel: tpu_custom_call.1
= control target key start
LH: loop header
LB: loop body
LE: loop exit
PB: predicated region body
PF: predicated region fallthrough
CT: control target
= control target key end

     0   :  { %6 = vsyncpa [#allocation3], 0  ;;  %s666_s0 = inlined_call_operand.hbm [shape: f32[2,4,256], index: 0, kind: input, shape index: {}]   ;;  %s667_s1 = inlined_call_operand.hbm [shape: f32[2,4,256], index: 1, kind: output, shape index: {}]  }
   0x1   :  { %8 = vsyncpa [#allocation3 + $0x1], 0 }
   0x2   :  { %9 = vsyncpa [#allocation4], 0 }
   0x3   :  { %11 = vsyncpa [#allocation4 + $0x1], 0  ;;  %s536_s6 = smov 0   ;;  %s538_s7 = smov 0  }
   0x4   :  { %s540_s8 = smov 0   ;;  %s542_s9 = smov 0  }
   0x5   :  { %s544_s10 = smov 0   ;;  %s546_s11 = smov 0  }
   0x6 LB: > { %s329_s12 = sadd.s32 4294967295, %s524_s11   ;;  %s330_s13 = sadd.s32 4294967294, %s524_s11   ;;  %s524_s11 = sphi %s546_s11, %s17_s11   ;;  %s520_s10 = sphi %s544_s10, %s676_s10   ;;  %s516_s9 = sphi %s542_s9, %s675_s9   ;;  %s512_s8 = sphi %s540_s8, %s674_s8   ;;  %s508_s7 = sphi %s538_s7, %s673_s7   ;;  %s504_s6 = sphi %s536_s6, %s672_s6  }
   0x7   : > { %s29_s14 = sadd.s32 1, %s520_s10  ;;  %s38_s15 = sadd.s32 1, %s512_s8 }
   0x8   : > { %p31_p0 = scmp.ge.s32.totalorder %s29_s14, 2  ;;  %p45_p1 = scmp.ne.s32.totalorder %s512_s8, %s508_s7 }
   0x9   : > { %p46_p2 = scmp.eq.s32.totalorder %s524_s11, 0  ;;  %p51_p3 = scmp.ne.s32.totalorder %s508_s7, %s504_s6 }
   0xa   : > { %s678_s14 = smov (%p31_p0, %s29_s14), 0  ;;  %p52_p5 = scmp.eq.s32.totalorder %s329_s12, 0 }
   0xb   : > { %p577_p4 = por %p46_p2, %p45_p1  ;;  %s33_s17 = ssub.s32 %s520_s10, %s678_s14 }
   0xc   : > { %p77_p6 = scmp.eq.s32.totalorder %s329_s12, 1  ;;  %p36_p7 = scmp.eq.s32.totalorder %s33_s17, 0 }
   0xd   : > { %p583_p8 = por %p52_p5, %p51_p3  ;;  %p83_p10 = scmp.eq.s32.totalorder %s330_s13, 1 }
   0xe   : > { %p587_p9 = por %p77_p6, %p45_p1  ;;  %p332_p12 = scmp.ge.s32.totalorder %s524_s11, 2 }
   0xf   : > { %s592_s20 = scalar_select %p36_p7, %s512_s8, %s38_s15  }
  0x10   : > { %p594_p11 = por %p83_p10, %p51_p3  ;;  %p358_p13 = scmp.lt.s32.totalorder %s524_s11, 2 }
  0x11   : > { %s103_s22 = sand.u32 1, %s512_s8   ;;  %s344_s24 = sshll.u32 %s520_s10, 3 }
  0x12   : > { %s333_s23 = sshll.u32 %s103_s22, 3  ;;  %s114_s27 = scalar_lea.hbm %s666_s0, %s344_s24 }
  0x13   : > { %s107_s28 = scalar_lea.vmem [#allocation2], %s333_s23  ;;  %s116_s30 = sshll.u32 %s114_s27, 4  ;;  %s117_s30 = int_to_ptr.hbm [resolvable:$true] %s116_s30 }
  0x14   : > { %s118_s29 = sshll.u32 %s107_s28, 4  ;;  %p351_p0 = pnand %p358_p13, %p577_p4  ;;  %s119_s29 = int_to_ptr.vmem [resolvable:$true] %s118_s29 }
  0x15   : > { %p336_p1 = scmp.ge.s32.totalorder %s524_s11, 1  ;;  %p123_p2 = scmp.lt.s32.totalorder %s524_s11, 3 }
  0x16   : > { %s104_s2 = scalar_lea.sflag [#allocation3], %s103_s22 }
  0x17   : > { %353 = dma.hbm_to_vmem [thread:$0]  (!%p351_p0), %s117_s30, 128, %s119_s29, %s104_s2  }
  0x18   : > { %p124_p3 = pnand %p336_p1, %p123_p2 }
  0x19   : > { %s610_s3 = sand.u32 (!%p124_p3), 1, %s508_s7  }
  0x1a   : > { %127 = sbr.rel (%p124_p3) target bundleno = 114 (0x72), region = 24  ;;  %s337_s4 = sshll.u32 (!%p124_p3), %s610_s3, 3 }
  0x1b   : > { %s130_s5 = scalar_lea.sflag (!%p124_p3), [#allocation3], %s610_s3  ;;  %s133_s12 = scalar_lea.vmem (!%p124_p3), [#allocation2], %s337_s4 }
  0x1f   : > { %495 = dma.done.wait (%p583_p8), %s130_s5, 128  }
  0x20   : > { %497 = vsyncadd (%p583_p8), %s130_s5, 4294967168  ;;  %v155_v0 = vld [vmem:[%s133_s12] sm:$0xff]  ;;  %vm162_vm0 = vcmask 1043456   ;;  %s345_s13 = sshll.u32 %s516_s9, 3  ;;  %s152_s18 = scalar_lea.vmem [#allocation5], %s337_s4 }
  0x21   : > { %157 = vst [vmem:[#allocation1] ss:$2 sm:$0xff] %v155_v0  ;;  %s240_s17 = scalar_lea.hbm %s667_s1, %s345_s13  ;;  %s242_s22 = sshll.u32 %s152_s18, 4  ;;  %s243_s22 = int_to_ptr.vmem [resolvable:$true] %s242_s22 }
  0x22   : > { %s244_s23 = sshll.u32 %s240_s17, 4  ;;  %s227_s9 = scalar_lea.sflag [#allocation4], %s610_s3  ;;  %s245_s23 = int_to_ptr.hbm [resolvable:$true] %s244_s23 }
  0x23   : > { %s456_s24 = sshra.s32 %s245_s23, 4  ;;  %s462_s28 = scalar_lea.hbm %s667_s1, 16  ;;  %s457_s24 = int_to_ptr.hbm [resolvable:$true] %s456_s24 }
  0x24   : > { %s458_s25 = scalar_lea.hbm %s457_s24, 8  ;;  %p463_p7 = scmp.lt.s32.totalorder %s457_s24, %s667_s1 }
  0x25   : > { %p459_p4 = scmp.ne.s32.totalorder %s457_s24, %s458_s25  ;;  %p464_p8 = scmp.lt.s32.totalorder %s462_s28, %s458_s25 }
  0x27   : > { %p460_p5 = pnand %p459_p4, %p587_p9  ;;  %p465_p10 = por %p464_p8, %p463_p7 }
  0x28   : > { %v158_v1 = vld.sshfl [vmem:[#allocation1] sm:$0xff pattern:$0x75316420]  ;;  %v159_v2 = vld.sshfl [vmem:[#allocation1 + $0x8] sm:$0xff pattern:$0x75316420] }
  0x29   : > { %v163_v3 = vsel %vm162_vm0, %v158_v1, -inf  ;;  %v170_v4 = vsel %vm162_vm0, %v159_v2, -inf  ;;  %p461_p6 = pneg %p460_p5 }
  0x2a   : > { %v164_v5 = vrot.slane %v163_v3, 4  ;;  %v171_v6 = vrot.slane %v170_v4, 4 }
  0x2b   : > { %p466_p13 = pnand %p465_p10, %p461_p6 }
  0x2c   : > { %v165_v7 = vmax.f32 %v163_v3, %v164_v5  ;;  %v172_v8 = vmax.f32 %v170_v4, %v171_v6 }
  0x2e   : > { %v166_v9 = vrot.slane %v165_v7, 2  ;;  %v173_v10 = vrot.slane %v172_v8, 2 }
  0x30   : > { %v167_v11 = vmax.f32 %v165_v7, %v166_v9  ;;  %v174_v12 = vmax.f32 %v172_v8, %v173_v10 }
  0x32   : > { %v168_v13 = vrot.slane %v167_v11, 1  ;;  %v175_v14 = vrot.slane %v174_v12, 1 }
  0x34   : > { %v176_v15 = vmax.f32 %v174_v12, %v175_v14  ;;  %v169_v16 = vmax.f32 %v167_v11, %v168_v13 }
  0x36   : > { %v179_v17 = vrot.slane %v176_v15, 4 }
  0x38   : > { %v180_v18 = vsel %vm162_vm0, %v169_v16, %v179_v17 }
  0x39   : > { %v182_v19 = vsub.f32 %v155_v0, %v180_v18 }
  0x3b   : > { %v183_v20 = vmul.f32 1.442695, %v182_v19 }
  0x3d   : > { %408 = vpow2.f32 %v183_v20 }
  0x43   : > { %v409_v21 = vpop.eup %408 }
  0x44   : > { %186 = vst [vmem:[#allocation1] ss:$2 sm:$0xff] %v409_v21 }
  0x4b   : > { %v187_v22 = vld.sshfl [vmem:[#allocation1] sm:$0xff pattern:$0x75316420]  ;;  %v188_v23 = vld.sshfl [vmem:[#allocation1 + $0x8] sm:$0xff pattern:$0x75316420] }
  0x4c   : > { %v191_v24 = vsel %vm162_vm0, %v187_v22, 0.0  ;;  %v198_v25 = vsel %vm162_vm0, %v188_v23, 0.0 }
  0x4d   : > { %v192_v26 = vrot.slane %v191_v24, 4  ;;  %v199_v27 = vrot.slane %v198_v25, 4 }
  0x4f   : > { %v193_v28 = vadd.f32 %v192_v26, %v191_v24  ;;  %v200_v29 = vadd.f32 %v199_v27, %v198_v25 }
  0x51   : > { %v194_v30 = vrot.slane %v193_v28, 2  ;;  %v201_v31 = vrot.slane %v200_v29, 2 }
  0x53   : > { %v195_v32 = vadd.f32 %v194_v30, %v193_v28  ;;  %v202_v33 = vadd.f32 %v201_v31, %v200_v29 }
  0x55   : > { %v196_v34 = vrot.slane %v195_v32, 1  ;;  %v203_v35 = vrot.slane %v202_v33, 1 }
  0x57   : > { %v204_v36 = vadd.f32 %v203_v35, %v202_v33  ;;  %v197_v37 = vadd.f32 %v196_v34, %v195_v32 }
  0x59   : > { %v207_v38 = vrot.slane %v204_v36, 4 }
  0x5b   : > { %v208_v39 = vsel %vm162_vm0, %v197_v37, %v207_v38 }
  0x5c   : > { %410 = vrcp.f32 %v208_v39  ;;  %v221_v43 = vand.u32 2147483648, %v208_v39  ;;  %v219_v45 = vand.u32 2147483647, %v208_v39  ;;  %vm215_vm2 = vweird.f32 %v208_v39 }
  0x5e   : > { %v222_v47 = vor.u32 1.1754944e-38, %v221_v43  ;;  %vm220_vm4 = vcmp.eq.f32.partialorder %v219_v45, 8.507059e+37 }
  0x62   : > { %v411_v40 = vpop.eup %410 }
  0x63   : > { %v211_v41 = vmul.f32 %v411_v40, %v208_v39  ;;  %vm216_vm1 = vweird.f32 %v411_v40 }
  0x64   : > { %vm217_vm3 = vmor %vm215_vm2, %vm216_vm1 }
  0x65   : > { %v212_v42 = vsub.f32 1.0, %v211_v41 }
  0x67   : > { %v213_v44 = vmul.f32 %v411_v40, %v212_v42 }
  0x69   : > { %v214_v46 = vadd.f32 %v411_v40, %v213_v44 }
  0x6b   : > { %v218_v48 = vsel %vm217_vm3, %v411_v40, %v214_v46 }
  0x6c   : > { %v223_v49 = vsel %vm220_vm4, %v222_v47, %v218_v48 }
  0x6d   : > { %v224_v50 = vmul.f32 %v409_v21, %v223_v49 }
  0x6f   : > { %225 = vst [vmem:[%s152_s18] sm:$0xff] %v224_v50 }
  0x70   : > { %469 = shalt.err (!%p466_p13)
}
  0x71   : > { %348 = dma.vmem_to_hbm [thread:$0]  (%p587_p9), %s243_s22, 128, %s245_s23, %s227_s9  }
  0x72 PF: > { %s256_s2 = sand.u32 1, %s504_s6   ;;  %p355_p0 = pnand %p332_p12, %p594_p11 }
  0x73   : > { %s257_s3 = scalar_lea.sflag [#allocation4], %s256_s2 }
  0x74   : > { %p356_p1 = pneg %p355_p0 }
  0x76   : > { %499 = dma.done.wait (%p356_p1), %s257_s3, 128  }
  0x77   : > { %501 = vsyncadd (%p356_p1), %s257_s3, 4294967168  ;;  %s17_s11 = sadd.s32 1, %s524_s11   ;;  %s672_s6 = smov %s508_s7 }
  0x78   : > { %p14_p2 = scmp.ge.s32.totalorder %s17_s11, 4   ;;  %s673_s7 = smov %s512_s8 }
  0x79   : > { %s674_s8 = smov %s592_s20  ;;  %s675_s9 = smov %s520_s10 }
  0x7a   : > { %s676_s10 = smov %s678_s14  ;;  %16 = sbr.rel (!%p14_p2) target bundleno = 6 (0x6), region = 69 }
  0x7f   :  { %263 = vsyncpa [#allocation3], 1 }
  0x80   :  { %265 = vsyncpa [#allocation3 + $0x1], 1 }
  0x81   :  { %266 = vsyncpa [#allocation4], 1 }
  0x82   :  { %268 = vsyncpa [#allocation4 + $0x1], 1 }

</bundles_post_ra>
